<compile_context>
chip_gen: v6e
topology: v6e:2x2x1
jax: 0.10.0
libtpu: 0.0.40
codegen_flags: <defaults>
</compile_context>

<pallas_src>
import functools
import math

import jax
import jax.numpy as jnp
import numpy as np
from jax import lax
from jax.experimental import pallas as pl
from jax.experimental.pallas import tpu as pltpu


# ------------------------------ fused kernel --------------------------------


def _lane_roll(x, shift):
    """Cyclic shift of the lane (last) axis: out[:, c] = x[:, (c + shift) % n].

    Implemented as two static lane slices + a concat (always lowers on Mosaic).
    pltpu.roll would also work here; only the *consistency* of the shift between
    K and V matters for correctness, not its direction.
    """
    if shift == 0:
        return x
    return jnp.concatenate([x[:, shift:], x[:, :shift]], axis=-1)


def _mha_fused_kernel(x_ref, wqkv_ref, bqkv_ref, wo_ref, bo_ref, o_ref, *,
                      num_heads, head_dim):
    f32 = jnp.float32
    H, D = num_heads, head_dim
    tb, hidden = x_ref.shape              # tokens in this grid block, hidden size

    # Constant head-pooling selectors (built without integer division -> any D works):
    #   pool[c, h]  = 1  iff  h*D <= c < (h+1)*D   (sum a head's D lanes -> one column)
    #   poolT[h, c] = 1  iff  h*D <= c < (h+1)*D   (broadcast a head scalar over its D lanes)
    c_i = lax.broadcasted_iota(jnp.int32, (hidden, H), 0)
    h_i = lax.broadcasted_iota(jnp.int32, (hidden, H), 1)
    pool = ((c_i >= h_i * D) & (c_i < (h_i + 1) * D)).astype(f32)        # (hidden, H)
    h_j = lax.broadcasted_iota(jnp.int32, (H, hidden), 0)
    c_j = lax.broadcasted_iota(jnp.int32, (H, hidden), 1)
    poolT = ((c_j >= h_j * D) & (c_j < (h_j + 1) * D)).astype(f32)       # (H, hidden)

    x = x_ref[...]                                                       # (tb, hidden)

    # 1) Fused QKV projection at natural FLOPs (scale and 1/sqrt(D) already folded
    #    into the Q columns / bias in the wrapper).                              (MXU)
    qkv = jnp.dot(x, wqkv_ref[...], preferred_element_type=f32) + bqkv_ref[...]
    q = qkv[:, 0 * hidden:1 * hidden]
    k = qkv[:, 1 * hidden:2 * hidden]
    v = qkv[:, 2 * hidden:3 * hidden]

    # 2) Per-token H x H head scores via the diagonal-shift decomposition:
    #    scores[s][t, h] = <q[t, head h], k[t, head (h+s) % H]>                  (VPU+MXU)
    scores = []
    for s in range(H):
        k_s = _lane_roll(k, s * D)
        scores.append(jnp.dot(q * k_s, pool, preferred_element_type=f32))  # (tb, H)

    # 3) Softmax over the key-head axis == softmax over the shift index per (token, head).
    m = scores[0]
    for s in range(1, H):
        m = jnp.maximum(m, scores[s])
    exps = [jnp.exp(sc - m) for sc in scores]
    denom = exps[0]
    for s in range(1, H):
        denom = denom + exps[s]
    inv = pl.reciprocal(denom, approx=False)   # exact (1e-4 check); approx=True -> EUP vrcp

    # 4) Weighted sum of values, reusing the SAME lane shifts for V.             (MXU+VPU)
    #    weighted[t, h*D + d] = sum_g attn[t, h, g] * v[t, g*D + d]
    weighted = jnp.dot(exps[0] * inv, poolT, preferred_element_type=f32) * v
    for s in range(1, H):
        a_exp = jnp.dot(exps[s] * inv, poolT, preferred_element_type=f32)  # (tb, hidden)
        weighted = weighted + a_exp * _lane_roll(v, s * D)

    # 5) Output projection at natural FLOPs.                                     (MXU)
    o_ref[...] = jnp.dot(weighted, wo_ref[...], preferred_element_type=f32) + bo_ref[...]


# ------------------------------ wrapper -------------------------------------


def multi_head_attention(x, params, num_heads, block_tokens=None):
    B, S, hidden = x.shape
    assert hidden % num_heads == 0
    D = hidden // num_heads
    T = B * S
    x2 = x.reshape(T, hidden)

    if block_tokens is None:
        block_tokens = T
        if T > 256:
            for cand in range(256, 7, -1):           # biggest divisor of T, multiple of 8
                if cand % 8 == 0 and T % cand == 0:
                    block_tokens = cand
                    break
    assert T % block_tokens == 0
    grid = (T // block_tokens,)

    # Fold the learned per-head_dim scale AND the 1/sqrt(D) softmax factor into the query
    # projection columns at trace time:  (x @ Wq + bq) * s == x @ (Wq * s) + bq * s.
    colscale = (jnp.tile(params["scale"], num_heads) * (1.0 / math.sqrt(D)))[None, :]
    w_qkv = jnp.concatenate(
        [params["wq"] * colscale, params["wk"], params["wv"]], axis=1)    # (hidden, 3*hidden)
    b_qkv = jnp.concatenate(
        [params["bq"] * colscale, params["bk"], params["bv"]], axis=1)    # (1, 3*hidden)

    y2 = pl.pallas_call(
        functools.partial(_mha_fused_kernel, num_heads=num_heads, head_dim=D),
        out_shape=jax.ShapeDtypeStruct((T, hidden), jnp.float32),
        grid=grid,
        in_specs=[
            pl.BlockSpec((block_tokens, hidden), lambda i: (i, 0)),   # x (token block)
            pl.BlockSpec((hidden, 3 * hidden), lambda i: (0, 0)),     # fused W_qkv (resident)
            pl.BlockSpec((1, 3 * hidden), lambda i: (0, 0)),          # fused b_qkv
            pl.BlockSpec((hidden, hidden), lambda i: (0, 0)),         # Wo
            pl.BlockSpec((1, hidden), lambda i: (0, 0)),              # bo
        ],
        out_specs=pl.BlockSpec((block_tokens, hidden), lambda i: (i, 0)),
        compiler_params=pltpu.CompilerParams(
            # token blocks are fully independent -> megacore / dual-TC sharding
            dimension_semantics=("parallel",)),
    )(x2, w_qkv, b_qkv, params["wo"], params["bo"])

    return y2.reshape(B, S, hidden)


# ------------------------------ reference -----------------------------------


def reference(x, params, num_heads):
    """Pure-JAX mirror of the PyTorch forward (for correctness check)."""
    B = x.shape[0]
    hidden = x.shape[-1]
    D = hidden // num_heads

    def lin(v, w, b):
        return v @ w + b

    keys = lin(x, params["wk"], params["bk"]).reshape(B, -1, num_heads, D)
    queries = lin(x, params["wq"], params["bq"]).reshape(B, -1, num_heads, D)
    values = lin(x, params["wv"], params["bv"]).reshape(B, -1, num_heads, D)
    queries = queries * params["scale"]
    scores = jnp.matmul(queries, jnp.swapaxes(keys, -2, -1)) / math.sqrt(D)
    attn = jax.nn.softmax(scores, axis=-1)
    weighted = jnp.matmul(attn, values).reshape(B, -1, D * num_heads)
    return lin(weighted, params["wo"], params["bo"])


# ------------------------------ params --------------------------------------


def init_params(key, hidden, num_heads):
    D = hidden // num_heads
    ks = jax.random.split(key, 9)
    bound = 1.0 / math.sqrt(hidden)

    def u(k, shape):
        return jax.random.uniform(k, shape, jnp.float32, minval=-bound, maxval=bound)

    return {
        # weights stored as (in, out) so y = x @ W + b
        "wq": u(ks[0], (hidden, hidden)), "bq": u(ks[1], (1, hidden)),
        "wk": u(ks[2], (hidden, hidden)), "bk": u(ks[3], (1, hidden)),
        "wv": u(ks[4], (hidden, hidden)), "bv": u(ks[5], (1, hidden)),
        "wo": u(ks[6], (hidden, hidden)), "bo": u(ks[7], (1, hidden)),
        "scale": jax.random.normal(ks[8], (D,), jnp.float32),  # nn.Parameter(randn(head_dim))
    }


# ------------------------------ main ----------------------------------------


if __name__ == "__main__":
    B, S, HIDDEN, NUM_HEADS = 2, 8, 32, 8

    key = jax.random.PRNGKey(0)
    kx, kp = jax.random.split(key)
    x = jax.random.normal(kx, (B, S, HIDDEN), dtype=jnp.float32)
    params = init_params(kp, HIDDEN, NUM_HEADS)

    y = multi_head_attention(x, params, NUM_HEADS)
    y = jax.block_until_ready(y)

    y_ref = reference(x, params, NUM_HEADS)
    np.testing.assert_allclose(np.asarray(y), np.asarray(y_ref), rtol=1e-4, atol=1e-4)
    assert y.shape == (B, S, HIDDEN)

    print("KERNEL_OK")
</pallas_src>

<mosaic_0001>
module attributes {stable_mosaic.version = 11 : i64} {
  func.func @_mha_fused_kernel(%arg0: i32, %arg1: memref<16x32xf32, #tpu.memory_space<vmem>>, %arg2: memref<32x96xf32, #tpu.memory_space<vmem>>, %arg3: memref<1x96xf32, #tpu.memory_space<vmem>>, %arg4: memref<32x32xf32, #tpu.memory_space<vmem>>, %arg5: memref<1x32xf32, #tpu.memory_space<vmem>>, %arg6: memref<16x32xf32, #tpu.memory_space<vmem>>) attributes {dimension_semantics = [#tpu.dimension_semantics<parallel>], iteration_bounds = array<i64: 1>, scalar_prefetch = 0 : i64, scratch_operands = 0 : i64, tpu.core_type = #tpu.core_type<tc>, window_params = [{transform_indices = @transform_0, window_bounds = array<i64: 16, 32>}, {pipeline_mode = #tpu.pipeline_mode<synchronous>, transform_indices = @transform_1, window_bounds = array<i64: 32, 96>}, {pipeline_mode = #tpu.pipeline_mode<synchronous>, transform_indices = @transform_2, window_bounds = array<i64: 1, 96>}, {pipeline_mode = #tpu.pipeline_mode<synchronous>, transform_indices = @transform_3, window_bounds = array<i64: 32, 32>}, {pipeline_mode = #tpu.pipeline_mode<synchronous>, transform_indices = @transform_4, window_bounds = array<i64: 1, 32>}, {transform_indices = @transform_5, window_bounds = array<i64: 16, 32>}]} {
    %0 = tpu.iota {dimensions = array<i32: 0>} : vector<32x8xi32>
    %1 = tpu.iota {dimensions = array<i32: 1>} : vector<32x8xi32>
    %c4_i32 = arith.constant 4 : i32
    %2 = vector.broadcast %c4_i32 : i32 to vector<32x8xi32>
    %3 = arith.muli %1, %2 : vector<32x8xi32>
    %4 = arith.cmpi sge, %0, %3 : vector<32x8xi32>
    %c1_i32 = arith.constant 1 : i32
    %5 = vector.broadcast %c1_i32 : i32 to vector<32x8xi32>
    %6 = arith.addi %1, %5 : vector<32x8xi32>
    %c4_i32_0 = arith.constant 4 : i32
    %7 = vector.broadcast %c4_i32_0 : i32 to vector<32x8xi32>
    %8 = arith.muli %6, %7 : vector<32x8xi32>
    %9 = arith.cmpi slt, %0, %8 : vector<32x8xi32>
    %10 = arith.andi %4, %9 : vector<32x8xi1>
    %11 = arith.extui %10 : vector<32x8xi1> to vector<32x8xi32>
    %12 = arith.sitofp %11 : vector<32x8xi32> to vector<32x8xf32>
    %13 = tpu.iota {dimensions = array<i32: 0>} : vector<8x32xi32>
    %14 = tpu.iota {dimensions = array<i32: 1>} : vector<8x32xi32>
    %c4_i32_1 = arith.constant 4 : i32
    %15 = vector.broadcast %c4_i32_1 : i32 to vector<8x32xi32>
    %16 = arith.muli %13, %15 : vector<8x32xi32>
    %17 = arith.cmpi sge, %14, %16 : vector<8x32xi32>
    %c1_i32_2 = arith.constant 1 : i32
    %18 = vector.broadcast %c1_i32_2 : i32 to vector<8x32xi32>
    %19 = arith.addi %13, %18 : vector<8x32xi32>
    %c4_i32_3 = arith.constant 4 : i32
    %20 = vector.broadcast %c4_i32_3 : i32 to vector<8x32xi32>
    %21 = arith.muli %19, %20 : vector<8x32xi32>
    %22 = arith.cmpi slt, %14, %21 : vector<8x32xi32>
    %23 = arith.andi %17, %22 : vector<8x32xi1>
    %24 = arith.extui %23 : vector<8x32xi1> to vector<8x32xi32>
    %25 = arith.sitofp %24 : vector<8x32xi32> to vector<8x32xf32>
    %c0 = arith.constant 0 : index
    %c0_4 = arith.constant 0 : index
    %26 = vector.load %arg1[%c0, %c0_4] : memref<16x32xf32, #tpu.memory_space<vmem>>, vector<16x32xf32>
    %c0_5 = arith.constant 0 : index
    %c0_6 = arith.constant 0 : index
    %27 = vector.load %arg2[%c0_5, %c0_6] : memref<32x96xf32, #tpu.memory_space<vmem>>, vector<32x96xf32>
    %cst = arith.constant dense<0.000000e+00> : vector<16x96xf32>
    %28 = tpu.matmul %26, %27, %cst {dimension_numbers = #tpu.dot_dimension_numbers<[1], [0], [0], [1], [0, 0, 1, 1], [], []>} : vector<16x32xf32>, vector<32x96xf32>, vector<16x96xf32> -> vector<16x96xf32>
    %c0_7 = arith.constant 0 : index
    %c0_8 = arith.constant 0 : index
    %29 = vector.load %arg3[%c0_7, %c0_8] : memref<1x96xf32, #tpu.memory_space<vmem>>, vector<1x96xf32>
    %30 = vector.broadcast %29 : vector<1x96xf32> to vector<16x96xf32>
    %31 = arith.addf %28, %30 : vector<16x96xf32>
    %32 = vector.extract_strided_slice %31 {offsets = [0, 0], sizes = [16, 32], strides = [1, 1]} : vector<16x96xf32> to vector<16x32xf32>
    %33 = vector.extract_strided_slice %31 {offsets = [0, 32], sizes = [16, 32], strides = [1, 1]} : vector<16x96xf32> to vector<16x32xf32>
    %34 = vector.extract_strided_slice %31 {offsets = [0, 64], sizes = [16, 32], strides = [1, 1]} : vector<16x96xf32> to vector<16x32xf32>
    %35 = arith.mulf %32, %33 : vector<16x32xf32>
    %cst_9 = arith.constant dense<0.000000e+00> : vector<16x8xf32>
    %36 = tpu.matmul %35, %12, %cst_9 {dimension_numbers = #tpu.dot_dimension_numbers<[1], [0], [0], [1], [0, 0, 1, 1], [], []>} : vector<16x32xf32>, vector<32x8xf32>, vector<16x8xf32> -> vector<16x8xf32>
    %37 = vector.extract_strided_slice %33 {offsets = [0, 4], sizes = [16, 28], strides = [1, 1]} : vector<16x32xf32> to vector<16x28xf32>
    %38 = vector.extract_strided_slice %33 {offsets = [0, 0], sizes = [16, 4], strides = [1, 1]} : vector<16x32xf32> to vector<16x4xf32>
    %39 = tpu.concatenate %37, %38 in 1 : vector<16x28xf32>, vector<16x4xf32> -> vector<16x32xf32>
    %40 = arith.mulf %32, %39 : vector<16x32xf32>
    %cst_10 = arith.constant dense<0.000000e+00> : vector<16x8xf32>
    %41 = tpu.matmul %40, %12, %cst_10 {dimension_numbers = #tpu.dot_dimension_numbers<[1], [0], [0], [1], [0, 0, 1, 1], [], []>} : vector<16x32xf32>, vector<32x8xf32>, vector<16x8xf32> -> vector<16x8xf32>
    %42 = vector.extract_strided_slice %33 {offsets = [0, 8], sizes = [16, 24], strides = [1, 1]} : vector<16x32xf32> to vector<16x24xf32>
    %43 = vector.extract_strided_slice %33 {offsets = [0, 0], sizes = [16, 8], strides = [1, 1]} : vector<16x32xf32> to vector<16x8xf32>
    %44 = tpu.concatenate %42, %43 in 1 : vector<16x24xf32>, vector<16x8xf32> -> vector<16x32xf32>
    %45 = arith.mulf %32, %44 : vector<16x32xf32>
    %cst_11 = arith.constant dense<0.000000e+00> : vector<16x8xf32>
    %46 = tpu.matmul %45, %12, %cst_11 {dimension_numbers = #tpu.dot_dimension_numbers<[1], [0], [0], [1], [0, 0, 1, 1], [], []>} : vector<16x32xf32>, vector<32x8xf32>, vector<16x8xf32> -> vector<16x8xf32>
    %47 = vector.extract_strided_slice %33 {offsets = [0, 12], sizes = [16, 20], strides = [1, 1]} : vector<16x32xf32> to vector<16x20xf32>
    %48 = vector.extract_strided_slice %33 {offsets = [0, 0], sizes = [16, 12], strides = [1, 1]} : vector<16x32xf32> to vector<16x12xf32>
    %49 = tpu.concatenate %47, %48 in 1 : vector<16x20xf32>, vector<16x12xf32> -> vector<16x32xf32>
    %50 = arith.mulf %32, %49 : vector<16x32xf32>
    %cst_12 = arith.constant dense<0.000000e+00> : vector<16x8xf32>
    %51 = tpu.matmul %50, %12, %cst_12 {dimension_numbers = #tpu.dot_dimension_numbers<[1], [0], [0], [1], [0, 0, 1, 1], [], []>} : vector<16x32xf32>, vector<32x8xf32>, vector<16x8xf32> -> vector<16x8xf32>
    %52 = vector.extract_strided_slice %33 {offsets = [0, 16], sizes = [16, 16], strides = [1, 1]} : vector<16x32xf32> to vector<16x16xf32>
    %53 = vector.extract_strided_slice %33 {offsets = [0, 0], sizes = [16, 16], strides = [1, 1]} : vector<16x32xf32> to vector<16x16xf32>
    %54 = tpu.concatenate %52, %53 in 1 : vector<16x16xf32>, vector<16x16xf32> -> vector<16x32xf32>
    %55 = arith.mulf %32, %54 : vector<16x32xf32>
    %cst_13 = arith.constant dense<0.000000e+00> : vector<16x8xf32>
    %56 = tpu.matmul %55, %12, %cst_13 {dimension_numbers = #tpu.dot_dimension_numbers<[1], [0], [0], [1], [0, 0, 1, 1], [], []>} : vector<16x32xf32>, vector<32x8xf32>, vector<16x8xf32> -> vector<16x8xf32>
    %57 = vector.extract_strided_slice %33 {offsets = [0, 20], sizes = [16, 12], strides = [1, 1]} : vector<16x32xf32> to vector<16x12xf32>
    %58 = vector.extract_strided_slice %33 {offsets = [0, 0], sizes = [16, 20], strides = [1, 1]} : vector<16x32xf32> to vector<16x20xf32>
    %59 = tpu.concatenate %57, %58 in 1 : vector<16x12xf32>, vector<16x20xf32> -> vector<16x32xf32>
    %60 = arith.mulf %32, %59 : vector<16x32xf32>
    %cst_14 = arith.constant dense<0.000000e+00> : vector<16x8xf32>
    %61 = tpu.matmul %60, %12, %cst_14 {dimension_numbers = #tpu.dot_dimension_numbers<[1], [0], [0], [1], [0, 0, 1, 1], [], []>} : vector<16x32xf32>, vector<32x8xf32>, vector<16x8xf32> -> vector<16x8xf32>
    %62 = vector.extract_strided_slice %33 {offsets = [0, 24], sizes = [16, 8], strides = [1, 1]} : vector<16x32xf32> to vector<16x8xf32>
    %63 = vector.extract_strided_slice %33 {offsets = [0, 0], sizes = [16, 24], strides = [1, 1]} : vector<16x32xf32> to vector<16x24xf32>
    %64 = tpu.concatenate %62, %63 in 1 : vector<16x8xf32>, vector<16x24xf32> -> vector<16x32xf32>
    %65 = arith.mulf %32, %64 : vector<16x32xf32>
    %cst_15 = arith.constant dense<0.000000e+00> : vector<16x8xf32>
    %66 = tpu.matmul %65, %12, %cst_15 {dimension_numbers = #tpu.dot_dimension_numbers<[1], [0], [0], [1], [0, 0, 1, 1], [], []>} : vector<16x32xf32>, vector<32x8xf32>, vector<16x8xf32> -> vector<16x8xf32>
    %67 = vector.extract_strided_slice %33 {offsets = [0, 28], sizes = [16, 4], strides = [1, 1]} : vector<16x32xf32> to vector<16x4xf32>
    %68 = vector.extract_strided_slice %33 {offsets = [0, 0], sizes = [16, 28], strides = [1, 1]} : vector<16x32xf32> to vector<16x28xf32>
    %69 = tpu.concatenate %67, %68 in 1 : vector<16x4xf32>, vector<16x28xf32> -> vector<16x32xf32>
    %70 = arith.mulf %32, %69 : vector<16x32xf32>
    %cst_16 = arith.constant dense<0.000000e+00> : vector<16x8xf32>
    %71 = tpu.matmul %70, %12, %cst_16 {dimension_numbers = #tpu.dot_dimension_numbers<[1], [0], [0], [1], [0, 0, 1, 1], [], []>} : vector<16x32xf32>, vector<32x8xf32>, vector<16x8xf32> -> vector<16x8xf32>
    %72 = arith.maximumf %36, %41 : vector<16x8xf32>
    %73 = arith.maximumf %72, %46 : vector<16x8xf32>
    %74 = arith.maximumf %73, %51 : vector<16x8xf32>
    %75 = arith.maximumf %74, %56 : vector<16x8xf32>
    %76 = arith.maximumf %75, %61 : vector<16x8xf32>
    %77 = arith.maximumf %76, %66 : vector<16x8xf32>
    %78 = arith.maximumf %77, %71 : vector<16x8xf32>
    %79 = arith.subf %36, %78 : vector<16x8xf32>
    %80 = math.exp %79 : vector<16x8xf32>
    %81 = arith.subf %41, %78 : vector<16x8xf32>
    %82 = math.exp %81 : vector<16x8xf32>
    %83 = arith.subf %46, %78 : vector<16x8xf32>
    %84 = math.exp %83 : vector<16x8xf32>
    %85 = arith.subf %51, %78 : vector<16x8xf32>
    %86 = math.exp %85 : vector<16x8xf32>
    %87 = arith.subf %56, %78 : vector<16x8xf32>
    %88 = math.exp %87 : vector<16x8xf32>
    %89 = arith.subf %61, %78 : vector<16x8xf32>
    %90 = math.exp %89 : vector<16x8xf32>
    %91 = arith.subf %66, %78 : vector<16x8xf32>
    %92 = math.exp %91 : vector<16x8xf32>
    %93 = arith.subf %71, %78 : vector<16x8xf32>
    %94 = math.exp %93 : vector<16x8xf32>
    %95 = arith.addf %80, %82 : vector<16x8xf32>
    %96 = arith.addf %95, %84 : vector<16x8xf32>
    %97 = arith.addf %96, %86 : vector<16x8xf32>
    %98 = arith.addf %97, %88 : vector<16x8xf32>
    %99 = arith.addf %98, %90 : vector<16x8xf32>
    %100 = arith.addf %99, %92 : vector<16x8xf32>
    %101 = arith.addf %100, %94 : vector<16x8xf32>
    %102 = tpu.reciprocal %101 : vector<16x8xf32> -> vector<16x8xf32>
    %103 = arith.mulf %80, %102 : vector<16x8xf32>
    %cst_17 = arith.constant dense<0.000000e+00> : vector<16x32xf32>
    %104 = tpu.matmul %103, %25, %cst_17 {dimension_numbers = #tpu.dot_dimension_numbers<[1], [0], [0], [1], [0, 0, 1, 1], [], []>} : vector<16x8xf32>, vector<8x32xf32>, vector<16x32xf32> -> vector<16x32xf32>
    %105 = arith.mulf %104, %34 : vector<16x32xf32>
    %106 = arith.mulf %82, %102 : vector<16x8xf32>
    %cst_18 = arith.constant dense<0.000000e+00> : vector<16x32xf32>
    %107 = tpu.matmul %106, %25, %cst_18 {dimension_numbers = #tpu.dot_dimension_numbers<[1], [0], [0], [1], [0, 0, 1, 1], [], []>} : vector<16x8xf32>, vector<8x32xf32>, vector<16x32xf32> -> vector<16x32xf32>
    %108 = vector.extract_strided_slice %34 {offsets = [0, 4], sizes = [16, 28], strides = [1, 1]} : vector<16x32xf32> to vector<16x28xf32>
    %109 = vector.extract_strided_slice %34 {offsets = [0, 0], sizes = [16, 4], strides = [1, 1]} : vector<16x32xf32> to vector<16x4xf32>
    %110 = tpu.concatenate %108, %109 in 1 : vector<16x28xf32>, vector<16x4xf32> -> vector<16x32xf32>
    %111 = arith.mulf %107, %110 : vector<16x32xf32>
    %112 = arith.addf %105, %111 : vector<16x32xf32>
    %113 = arith.mulf %84, %102 : vector<16x8xf32>
    %cst_19 = arith.constant dense<0.000000e+00> : vector<16x32xf32>
    %114 = tpu.matmul %113, %25, %cst_19 {dimension_numbers = #tpu.dot_dimension_numbers<[1], [0], [0], [1], [0, 0, 1, 1], [], []>} : vector<16x8xf32>, vector<8x32xf32>, vector<16x32xf32> -> vector<16x32xf32>
    %115 = vector.extract_strided_slice %34 {offsets = [0, 8], sizes = [16, 24], strides = [1, 1]} : vector<16x32xf32> to vector<16x24xf32>
    %116 = vector.extract_strided_slice %34 {offsets = [0, 0], sizes = [16, 8], strides = [1, 1]} : vector<16x32xf32> to vector<16x8xf32>
    %117 = tpu.concatenate %115, %116 in 1 : vector<16x24xf32>, vector<16x8xf32> -> vector<16x32xf32>
    %118 = arith.mulf %114, %117 : vector<16x32xf32>
    %119 = arith.addf %112, %118 : vector<16x32xf32>
    %120 = arith.mulf %86, %102 : vector<16x8xf32>
    %cst_20 = arith.constant dense<0.000000e+00> : vector<16x32xf32>
    %121 = tpu.matmul %120, %25, %cst_20 {dimension_numbers = #tpu.dot_dimension_numbers<[1], [0], [0], [1], [0, 0, 1, 1], [], []>} : vector<16x8xf32>, vector<8x32xf32>, vector<16x32xf32> -> vector<16x32xf32>
    %122 = vector.extract_strided_slice %34 {offsets = [0, 12], sizes = [16, 20], strides = [1, 1]} : vector<16x32xf32> to vector<16x20xf32>
    %123 = vector.extract_strided_slice %34 {offsets = [0, 0], sizes = [16, 12], strides = [1, 1]} : vector<16x32xf32> to vector<16x12xf32>
    %124 = tpu.concatenate %122, %123 in 1 : vector<16x20xf32>, vector<16x12xf32> -> vector<16x32xf32>
    %125 = arith.mulf %121, %124 : vector<16x32xf32>
    %126 = arith.addf %119, %125 : vector<16x32xf32>
    %127 = arith.mulf %88, %102 : vector<16x8xf32>
    %cst_21 = arith.constant dense<0.000000e+00> : vector<16x32xf32>
    %128 = tpu.matmul %127, %25, %cst_21 {dimension_numbers = #tpu.dot_dimension_numbers<[1], [0], [0], [1], [0, 0, 1, 1], [], []>} : vector<16x8xf32>, vector<8x32xf32>, vector<16x32xf32> -> vector<16x32xf32>
    %129 = vector.extract_strided_slice %34 {offsets = [0, 16], sizes = [16, 16], strides = [1, 1]} : vector<16x32xf32> to vector<16x16xf32>
    %130 = vector.extract_strided_slice %34 {offsets = [0, 0], sizes = [16, 16], strides = [1, 1]} : vector<16x32xf32> to vector<16x16xf32>
    %131 = tpu.concatenate %129, %130 in 1 : vector<16x16xf32>, vector<16x16xf32> -> vector<16x32xf32>
    %132 = arith.mulf %128, %131 : vector<16x32xf32>
    %133 = arith.addf %126, %132 : vector<16x32xf32>
    %134 = arith.mulf %90, %102 : vector<16x8xf32>
    %cst_22 = arith.constant dense<0.000000e+00> : vector<16x32xf32>
    %135 = tpu.matmul %134, %25, %cst_22 {dimension_numbers = #tpu.dot_dimension_numbers<[1], [0], [0], [1], [0, 0, 1, 1], [], []>} : vector<16x8xf32>, vector<8x32xf32>, vector<16x32xf32> -> vector<16x32xf32>
    %136 = vector.extract_strided_slice %34 {offsets = [0, 20], sizes = [16, 12], strides = [1, 1]} : vector<16x32xf32> to vector<16x12xf32>
    %137 = vector.extract_strided_slice %34 {offsets = [0, 0], sizes = [16, 20], strides = [1, 1]} : vector<16x32xf32> to vector<16x20xf32>
    %138 = tpu.concatenate %136, %137 in 1 : vector<16x12xf32>, vector<16x20xf32> -> vector<16x32xf32>
    %139 = arith.mulf %135, %138 : vector<16x32xf32>
    %140 = arith.addf %133, %139 : vector<16x32xf32>
    %141 = arith.mulf %92, %102 : vector<16x8xf32>
    %cst_23 = arith.constant dense<0.000000e+00> : vector<16x32xf32>
    %142 = tpu.matmul %141, %25, %cst_23 {dimension_numbers = #tpu.dot_dimension_numbers<[1], [0], [0], [1], [0, 0, 1, 1], [], []>} : vector<16x8xf32>, vector<8x32xf32>, vector<16x32xf32> -> vector<16x32xf32>
    %143 = vector.extract_strided_slice %34 {offsets = [0, 24], sizes = [16, 8], strides = [1, 1]} : vector<16x32xf32> to vector<16x8xf32>
    %144 = vector.extract_strided_slice %34 {offsets = [0, 0], sizes = [16, 24], strides = [1, 1]} : vector<16x32xf32> to vector<16x24xf32>
    %145 = tpu.concatenate %143, %144 in 1 : vector<16x8xf32>, vector<16x24xf32> -> vector<16x32xf32>
    %146 = arith.mulf %142, %145 : vector<16x32xf32>
    %147 = arith.addf %140, %146 : vector<16x32xf32>
    %148 = arith.mulf %94, %102 : vector<16x8xf32>
    %cst_24 = arith.constant dense<0.000000e+00> : vector<16x32xf32>
    %149 = tpu.matmul %148, %25, %cst_24 {dimension_numbers = #tpu.dot_dimension_numbers<[1], [0], [0], [1], [0, 0, 1, 1], [], []>} : vector<16x8xf32>, vector<8x32xf32>, vector<16x32xf32> -> vector<16x32xf32>
    %150 = vector.extract_strided_slice %34 {offsets = [0, 28], sizes = [16, 4], strides = [1, 1]} : vector<16x32xf32> to vector<16x4xf32>
    %151 = vector.extract_strided_slice %34 {offsets = [0, 0], sizes = [16, 28], strides = [1, 1]} : vector<16x32xf32> to vector<16x28xf32>
    %152 = tpu.concatenate %150, %151 in 1 : vector<16x4xf32>, vector<16x28xf32> -> vector<16x32xf32>
    %153 = arith.mulf %149, %152 : vector<16x32xf32>
    %154 = arith.addf %147, %153 : vector<16x32xf32>
    %c0_25 = arith.constant 0 : index
    %c0_26 = arith.constant 0 : index
    %155 = vector.load %arg4[%c0_25, %c0_26] : memref<32x32xf32, #tpu.memory_space<vmem>>, vector<32x32xf32>
    %cst_27 = arith.constant dense<0.000000e+00> : vector<16x32xf32>
    %156 = tpu.matmul %154, %155, %cst_27 {dimension_numbers = #tpu.dot_dimension_numbers<[1], [0], [0], [1], [0, 0, 1, 1], [], []>} : vector<16x32xf32>, vector<32x32xf32>, vector<16x32xf32> -> vector<16x32xf32>
    %c0_28 = arith.constant 0 : index
    %c0_29 = arith.constant 0 : index
    %157 = vector.load %arg5[%c0_28, %c0_29] : memref<1x32xf32, #tpu.memory_space<vmem>>, vector<1x32xf32>
    %158 = vector.broadcast %157 : vector<1x32xf32> to vector<16x32xf32>
    %159 = arith.addf %156, %158 : vector<16x32xf32>
    %c0_30 = arith.constant 0 : index
    %c0_31 = arith.constant 0 : index
    %160 = vector.load %arg6[%c0_30, %c0_31] : memref<16x32xf32, #tpu.memory_space<vmem>>, vector<16x32xf32>
    tpu.vector_store %arg6[%c0_30, %c0_31], %159 {strides = array<i32>} : memref<16x32xf32, #tpu.memory_space<vmem>>, vector<16x32xf32>,
    return
  }
  func.func @transform_0(%arg0: i32) -> (i32, i32) {
    %c0_i32 = arith.constant 0 : i32
    %c0_i32_0 = arith.constant 0 : i32
    return %arg0, %c0_i32 : i32, i32
  }
  func.func @transform_1(%arg0: i32) -> (i32, i32) {
    %c0_i32 = arith.constant 0 : i32
    %c0_i32_0 = arith.constant 0 : i32
    %c0_i32_1 = arith.constant 0 : i32
    return %c0_i32, %c0_i32_0 : i32, i32
  }
  func.func @transform_2(%arg0: i32) -> (i32, i32) {
    %c0_i32 = arith.constant 0 : i32
    %c0_i32_0 = arith.constant 0 : i32
    %c0_i32_1 = arith.constant 0 : i32
    return %c0_i32, %c0_i32_0 : i32, i32
  }
  func.func @transform_3(%arg0: i32) -> (i32, i32) {
    %c0_i32 = arith.constant 0 : i32
    %c0_i32_0 = arith.constant 0 : i32
    %c0_i32_1 = arith.constant 0 : i32
    return %c0_i32, %c0_i32_0 : i32, i32
  }
  func.func @transform_4(%arg0: i32) -> (i32, i32) {
    %c0_i32 = arith.constant 0 : i32
    %c0_i32_0 = arith.constant 0 : i32
    %c0_i32_1 = arith.constant 0 : i32
    return %c0_i32, %c0_i32_0 : i32, i32
  }
  func.func @transform_5(%arg0: i32) -> (i32, i32) {
    %c0_i32 = arith.constant 0 : i32
    %c0_i32_0 = arith.constant 0 : i32
    return %arg0, %c0_i32 : i32, i32
  }
}

</mosaic_0001>

<bundles_post_ra>
// kernel: tpu_custom_call.1
= control target key start
LH: loop header
LB: loop body
LE: loop exit
PB: predicated region body
PF: predicated region fallthrough
CT: control target
= control target key end

     0   :  { %10 = vsyncpa [#allocation3], 0  ;;  %s3009_s0 = inlined_call_operand.hbm [shape: f32[16,32], index: 0, kind: input, shape index: {}]   ;;  %s3010_s1 = inlined_call_operand.hbm [shape: f32[32,96], index: 1, kind: input, shape index: {}]   ;;  %s3011_s2 = inlined_call_operand.vmem [shape: f32[1,96], index: 2, kind: input, shape index: {}]   ;;  %s3012_s3 = inlined_call_operand.hbm [shape: f32[32,32], index: 3, kind: input, shape index: {}]   ;;  %s3013_s4 = inlined_call_operand.vmem [shape: f32[1,32], index: 4, kind: input, shape index: {}]   ;;  %s3014_s5 = inlined_call_operand.hbm [shape: f32[16,32], index: 5, kind: output, shape index: {}]  }
   0x1   :  { %11 = vsyncpa [#allocation6], 0 }
   0x2   :  { %12 = vsyncpa [#allocation4], 0  ;;  %s2387_s18 = smov [#allocation5]   ;;  %s2388_s20 = smov [#allocation2]  }
   0x3   :  { %s30_s19 = sshll.u32 %s2387_s18, 4  ;;  %s18_s21 = sshll.u32 %s2388_s20, 4  ;;  %s31_s19 = int_to_ptr.vmem [resolvable:$true] %s30_s19  ;;  %s19_s21 = int_to_ptr.vmem [resolvable:$true] %s18_s21 }
   0x4   :  { %s2309_s22 = scalar_lea.vmem %s31_s19, 512  ;;  %p2314_p1 = scmp.lt.s32.totalorder %s31_s19, %s31_s19 }
   0x5   :  { %p2310_p0 = scmp.ne.s32.totalorder %s31_s19, %s2309_s22  ;;  %p2315_p2 = scmp.lt.s32.totalorder %s2309_s22, %s2309_s22 }
   0x7   :  { %p2316_p3 = por %p2315_p2, %p2314_p1 }
   0x9   :  { %p2317_p4 = pnand %p2316_p3, %p2310_p0 }
   0xb   :  { %2320 = shalt.err (!%p2317_p4)
}
   0xc   :  { %s2389_s23 = smov 128   ;;  %s2390_s24 = smov 8  }
   0xd   :  { %36 = dma.hbm_to_vmem [thread:$0]  %s3010_s1, 512, %s31_s19, [#allocation6], %s2389_s23, %s2389_s23, %s2390_s24  }
   0xe   :  { %s2329_s27 = scalar_lea.vmem %s19_s21, 256  ;;  %p2334_p6 = scmp.lt.s32.totalorder %s19_s21, %s19_s21 }
   0xf   :  { %p2330_p5 = scmp.ne.s32.totalorder %s19_s21, %s2329_s27  ;;  %p2335_p7 = scmp.lt.s32.totalorder %s2329_s27, %s2329_s27 }
  0x11   :  { %p2336_p8 = por %p2335_p7, %p2334_p6 }
  0x13   :  { %p2337_p9 = pnand %p2336_p8, %p2330_p5 }
  0x15   :  { %2340 = shalt.err (!%p2337_p9)
}
  0x16   :  { %24 = dma.hbm_to_vmem [thread:$0]  %s3009_s0, 256, %s19_s21, [#allocation3], %s2389_s23, %s2389_s23, %s2390_s24  }
  0x17   :  { %s2391_s30 = smov [#allocation7]  }
  0x18   :  { %s44_s6 = sshll.u32 %s2391_s30, 4  ;;  %s45_s6 = int_to_ptr.vmem [resolvable:$true] %s44_s6 }
  0x19   :  { %s2349_s7 = scalar_lea.vmem %s45_s6, 512  ;;  %p2354_p11 = scmp.lt.s32.totalorder %s45_s6, %s45_s6 }
  0x1a   :  { %p2350_p10 = scmp.ne.s32.totalorder %s45_s6, %s2349_s7  ;;  %p2355_p12 = scmp.lt.s32.totalorder %s2349_s7, %s2349_s7 }
  0x1c   :  { %p2356_p13 = por %p2355_p12, %p2354_p11 }
  0x1e   :  { %p2357_p0 = pnand %p2356_p13, %p2350_p10 }
  0x20   :  { %2360 = shalt.err (!%p2357_p0)
}
  0x21   :  { %50 = dma.hbm_to_vmem [thread:$0]  %s3012_s3, 512, %s45_s6, [#allocation6], %s2389_s23, %s2389_s23, %s2390_s24  }
  0x22   :  { %2381 = dma.done.wait [#allocation3], 256  }
  0x23   :  { %2382 = vsyncadd [#allocation3], 4294967040 }
  0x24   :  { %2383 = dma.done.wait [#allocation6], 1024  }
  0x25   :  { %2384 = vsyncadd [#allocation6], 4294966272  ;;  %vm113_vm0 = vcmask 261120   ;;  %v105_v0 = vld [vmem:[#allocation5 + $0x18] sm:$0xff]  ;;  %v104_v1 = vld [vmem:[#allocation5 + $0x10] sm:$0xff]  ;;  %v62_v9 = vlaneseq  ;;  %s2392_s9 = smov 124  }
  0x26   :  { %2085 = vmatprep.subr.mxu0 %v105_v0  ;;  %v100_v2 = vld [vmem:[#allocation2] sm:$0xff]  ;;  %v103_v3 = vld [vmem:[#allocation5 + $0x8] sm:$0xff]  ;;  %v102_v4 = vld [vmem:[#allocation5] sm:$0xff]  ;;  %s2393_s10 = smov 96   ;;  %s2395_s11 = smov 92   ;;  %v2398_v18 = vmov 1.0  }
  0x27   :  { %2086 = vmatpush3.msra.mxu0 %v105_v0  ;;  %2093 = vmatprep.mubr.msk.f32.mxu0 %vm113_vm0, %v100_v2  ;;  %v101_v5 = vld [vmem:[#allocation2 + $0x8] sm:$0xff]  ;;  %v2470_v6 = vld [vmem:[%s3011_s2] ss:$0 sm:$0xff]  ;;  %v2479_v10 = vand.u32 127, %v62_v9  ;;  %v2481_v11 = vshrl.u32 %v62_v9, 7  ;;  %s2394_s2 = smov 120  }
  0x28   :  { %2087 = vmatprep.subr.mxu0 %v104_v1  ;;  %s2396_s12 = smov 116   ;;  %s2397_s13 = smov 88   ;;  %vm298_vm13 = vcmask 228352   ;;  %vm396_vm14 = vcmask 195584   ;;  %vm494_vm15 = vcmask 162816  }
  0x29   :  { %2088 = vmatpush3.msra.mxu0 %v104_v1  ;;  %v74_v12 = vadd.s32 1, %v2479_v10  ;;  %v66_v13 = vadd.s32 24, %v2481_v11  ;;  %v69_v14 = vmul.u32 4, %v2479_v10  ;;  %v65_v16 = vadd.s32 16, %v2481_v11  ;;  %s2399_s14 = smov 112   ;;  %s2400_s15 = smov 84  }
  0x2a   :  { %2089 = vmatprep.subr.mxu0 %v103_v3  ;;  %v64_v19 = vadd.s32 8, %v2481_v11  ;;  %s2401_s16 = smov 108   ;;  %s2402_s17 = smov 80  }
  0x2b   :  { %2090 = vmatpush3.msra.mxu0 %v103_v3  ;;  %v75_v15 = vmul.u32 4, %v74_v12  ;;  %vm73_vm1 = vcmp.ge.s32.totalorder %v66_v13, %v69_v14  ;;  %vm72_vm4 = vcmp.ge.s32.totalorder %v65_v16, %v69_v14  ;;  %vm70_vm10 = vcmp.ge.s32.totalorder %v2481_v11, %v69_v14  ;;  %s2403_s18 = smov 104   ;;  %s2404_s19 = smov 76  }
  0x2c   :  { %2091 = vmatprep.subr.mxu0 %v102_v4  ;;  %vm71_vm7 = vcmp.ge.s32.totalorder %v64_v19, %v69_v14  ;;  %s2405_s20 = smov 72   ;;  %s2406_s21 = smov 100  }
  0x2d   :  { %2092 = vmatpush3.msra.mxu0 %v102_v4  ;;  %vm79_vm2 = vcmp.lt.s32.totalorder %v66_v13, %v75_v15  ;;  %vm78_vm5 = vcmp.lt.s32.totalorder %v65_v16, %v75_v15  ;;  %vm77_vm8 = vcmp.lt.s32.totalorder %v64_v19, %v75_v15  ;;  %vm76_vm11 = vcmp.lt.s32.totalorder %v2481_v11, %v75_v15  ;;  %s2407_s22 = smov 68   ;;  %s2408_s25 = smov 64  }
  0x2e   :  { %2094 = vmatmul.mubr.msk.f32.vlgmr.msra.gmra.mxu0 %vm113_vm0, %v101_v5  ;;  %vm2495_vm3 = vmand %vm73_vm1, %vm79_vm2  ;;  %s2409_s26 = smov 60   ;;  %s2410_s27 = smov 56   ;;  %vm592_vm1 = vcmask 130048   ;;  %vm690_vm2 = vcmask 97280  }
  0x2f   :  { %2096 = vmatprep.subr.msk.mxu1 %vm2495_vm3, %v2398_v18  ;;  %2107 = vmatprep.subr.msk.mxu0 %vm2495_vm3, %v2398_v18  ;;  %vm2509_vm6 = vmand %vm72_vm4, %vm78_vm5  ;;  %s2411_s28 = smov 52   ;;  %s2412_s29 = smov 48   ;;  %vm788_vm4 = vcmask 64512   ;;  %vm886_vm5 = vcmask 31744  }
  0x30   :  { %2097 = vmatpush3.msk.msra.mxu1 %vm2495_vm3, %v2398_v18  ;;  %2108 = vmatpush3.msk.msra.mxu0 %vm2495_vm3, %v2398_v18  ;;  %vm2526_vm9 = vmand %vm71_vm7, %vm77_vm8  ;;  %s2413_s30 = smov 44   ;;  %s2414_s6 = smov 40  }
  0x31   :  { %2098 = vmatprep.subr.msk.mxu1 %vm2509_vm6, %v2398_v18  ;;  %2109 = vmatprep.subr.msk.mxu0 %vm2509_vm6, %v2398_v18  ;;  %vm2541_vm12 = vmand %vm70_vm10, %vm76_vm11  ;;  %s2415_s7 = smov 36   ;;  %s2416_s0 = smov [#allocation8]  }
  0x32   :  { %2099 = vmatpush3.msk.msra.mxu1 %vm2509_vm6, %v2398_v18  ;;  %2110 = vmatpush3.msk.msra.mxu0 %vm2509_vm6, %v2398_v18  ;;  %s1905_s3 = sshll.u32 %s2416_s0, 4  ;;  %s1906_s3 = int_to_ptr.vmem [resolvable:$true] %s1905_s3 }
  0x33   :  { %2100 = vmatprep.subr.msk.mxu1 %vm2526_vm9, %v2398_v18  ;;  %2111 = vmatprep.subr.msk.mxu0 %vm2526_vm9, %v2398_v18  ;;  %p2366_p2 = scmp.lt.s32.totalorder %s1906_s3, %s1906_s3 }
  0x34   :  { %2101 = vmatpush3.msk.msra.mxu1 %vm2526_vm9, %v2398_v18  ;;  %2112 = vmatpush3.msk.msra.mxu0 %vm2526_vm9, %v2398_v18 }
  0x35   :  { %2102 = vmatprep.subr.msk.mxu1 %vm2541_vm12, %v2398_v18  ;;  %2113 = vmatprep.subr.msk.mxu0 %vm2541_vm12, %v2398_v18 }
  0x36   :  { %2103 = vmatpush3.msk.msra.mxu1 %vm2541_vm12, %v2398_v18  ;;  %2114 = vmatpush3.msk.msra.mxu0 %vm2541_vm12, %v2398_v18 }
  0x37   :  { %2118 = vmatprep.subr.msk.mxu1 %vm2495_vm3, %v2398_v18  ;;  %2129 = vmatprep.subr.msk.mxu0 %vm2495_vm3, %v2398_v18 }
  0xee   :  { %v2095_v7 = vpop.f32.mrf.mxu0 }
  0xef   :  { %v2473_v8 = vadd.f32 %v2095_v7, %v2470_v6 }
  0xf0   :  { %v186_v23 = vpop.f32.mrf.mxu0 }
  0xf1   :  { %294 = vrot.lane.b32.xlu1 %v2473_v8, %s2392_s9  ;;  %199 = vrot.lane.b32.xlu0 %v2473_v8, %s2393_s10  ;;  %v2577_v24 = vadd.f32 %v2470_v6, %v186_v23 }
  0xf5   :  { %392 = vrot.lane.b32.xlu1 %v2473_v8, %s2394_s2  ;;  %288 = vrot.lane.b32.xlu0 %v2473_v8, %s2395_s11 }
  0xf9   :  { %490 = vrot.lane.b32.xlu1 %v2473_v8, %s2396_s12  ;;  %386 = vrot.lane.b32.xlu0 %v2473_v8, %s2397_s13 }
  0xfd   :  { %588 = vrot.lane.b32.xlu1 %v2473_v8, %s2399_s14  ;;  %484 = vrot.lane.b32.xlu0 %v2473_v8, %s2400_s15 }
 0x101   :  { %686 = vrot.lane.b32.xlu1 %v2473_v8, %s2401_s16  ;;  %582 = vrot.lane.b32.xlu0 %v2473_v8, %s2402_s17 }
 0x105   :  { %784 = vrot.lane.b32.xlu1 %v2473_v8, %s2403_s18  ;;  %680 = vrot.lane.b32.xlu0 %v2473_v8, %s2404_s19 }
 0x109   :  { %778 = vrot.lane.b32.xlu0 %v2473_v8, %s2405_s20  ;;  %286 = vrot.lane.b32.xlu1 %v2577_v24, %s2395_s11 }
 0x10d   :  { %292 = vrot.lane.b32.xlu1 %v2577_v24, %s2392_s9  ;;  %197 = vrot.lane.b32.xlu0 %v2577_v24, %s2393_s10  ;;  %s2361_s9 = scalar_lea.vmem %s1906_s3, 256 }
 0x10e   :  { %p2362_p1 = scmp.ne.s32.totalorder %s1906_s3, %s2361_s9  ;;  %p2367_p3 = scmp.lt.s32.totalorder %s2361_s9, %s2361_s9 }
 0x110   :  { %p2368_p4 = por %p2367_p3, %p2366_p2 }
 0x111   :  { %390 = vrot.lane.b32.xlu1 %v2577_v24, %s2394_s2  ;;  %384 = vrot.lane.b32.xlu0 %v2577_v24, %s2397_s13 }
 0x112   :  { %p2369_p5 = pnand %p2368_p4, %p2362_p1 }
 0x115   :  { %488 = vrot.lane.b32.xlu1 %v2577_v24, %s2396_s12  ;;  %482 = vrot.lane.b32.xlu0 %v2577_v24, %s2400_s15 }
 0x119   :  { %586 = vrot.lane.b32.xlu1 %v2577_v24, %s2399_s14  ;;  %580 = vrot.lane.b32.xlu0 %v2577_v24, %s2402_s17 }
 0x11d   :  { %684 = vrot.lane.b32.xlu1 %v2577_v24, %s2401_s16  ;;  %678 = vrot.lane.b32.xlu0 %v2577_v24, %s2404_s19 }
 0x121   :  { %782 = vrot.lane.b32.xlu1 %v2577_v24, %s2403_s18  ;;  %776 = vrot.lane.b32.xlu0 %v2577_v24, %s2405_s20 }
 0x125   :  { %880 = vrot.lane.b32.xlu1 %v2577_v24, %s2406_s21  ;;  %874 = vrot.lane.b32.xlu0 %v2577_v24, %s2407_s22 }
 0x129   :  { %882 = vrot.lane.b32.xlu1 %v2473_v8, %s2406_s21  ;;  %876 = vrot.lane.b32.xlu0 %v2473_v8, %s2407_s22 }
 0x12d   :  { %1135 = vrot.lane.b32.xlu1 %v2473_v8, %s2408_s25  ;;  %1226 = vrot.lane.b32.xlu0 %v2473_v8, %s2409_s26 }
 0x131   :  { %1321 = vrot.lane.b32.xlu1 %v2473_v8, %s2410_s27  ;;  %1224 = vrot.lane.b32.xlu0 %v2577_v24, %s2409_s26 }
 0x135   :  { %1416 = vrot.lane.b32.xlu1 %v2473_v8, %s2411_s28  ;;  %1319 = vrot.lane.b32.xlu0 %v2577_v24, %s2410_s27 }
 0x139   :  { %1511 = vrot.lane.b32.xlu1 %v2473_v8, %s2412_s29  ;;  %1414 = vrot.lane.b32.xlu0 %v2577_v24, %s2411_s28 }
 0x13d   :  { %1133 = vrot.lane.b32.xlu1 %v2577_v24, %s2408_s25  ;;  %1509 = vrot.lane.b32.xlu0 %v2577_v24, %s2412_s29 }
 0x141   :  { %1606 = vrot.lane.b32.xlu1 %v2473_v8, %s2413_s30  ;;  %1604 = vrot.lane.b32.xlu0 %v2577_v24, %s2413_s30 }
 0x145   :  { %1701 = vrot.lane.b32.xlu1 %v2473_v8, %s2414_s6  ;;  %1699 = vrot.lane.b32.xlu0 %v2577_v24, %s2414_s6 }
 0x149   :  { %1796 = vrot.lane.b32.xlu1 %v2473_v8, %s2415_s7  ;;  %1794 = vrot.lane.b32.xlu0 %v2577_v24, %s2415_s7 }
 0x163   :  { %v295_v25 = vpop.permute.xlu1 %294  ;;  %v200_v26 = vpop.permute.xlu0 %199 }
 0x164   :  { %v204_v44 = vmul.f32 %v200_v26, %v2473_v8 }
 0x167   :  { %v393_v27 = vpop.permute.xlu1 %392  ;;  %v2621_v28 = vpop.permute.xlu0 %288 }
 0x168   :  { %v300_v39 = vsel %vm298_vm13, %v2621_v28, %v295_v25 }
 0x169   :  { %v302_v46 = vmul.f32 %v300_v39, %v2473_v8 }
 0x16b   :  { %v491_v29 = vpop.permute.xlu1 %490  ;;  %v2623_v30 = vpop.permute.xlu0 %386 }
 0x16c   :  { %v398_v51 = vsel %vm396_vm14, %v2623_v30, %v393_v27 }
 0x16d   :  { %v400_v55 = vmul.f32 %v398_v51, %v2473_v8 }
 0x16f   :  { %v2625_v31 = vpop.permute.xlu1 %588  ;;  %v2627_v32 = vpop.permute.xlu0 %484 }
 0x170   :  { %v496_v56 = vsel %vm494_vm15, %v2627_v32, %v491_v29 }
 0x171   :  { %v498_v60 = vmul.f32 %v496_v56, %v2473_v8 }
 0x173   :  { %v2629_v33 = vpop.permute.xlu1 %686  ;;  %v2631_v34 = vpop.permute.xlu0 %582 }
 0x174   :  { %v594_v1 = vsel %vm592_vm1, %v2631_v34, %v2625_v31 }
 0x175   :  { %v596_v3 = vmul.f32 %v594_v1, %v2473_v8 }
 0x177   :  { %v2633_v35 = vpop.permute.xlu1 %784  ;;  %v2635_v36 = vpop.permute.xlu0 %680 }
 0x178   :  { %v692_v4 = vsel %vm690_vm2, %v2635_v36, %v2629_v33 }
 0x179   :  { %v694_v13 = vmul.f32 %v692_v4, %v2473_v8 }
 0x17b   :  { %v2637_v37 = vpop.permute.xlu0 %778  ;;  %v2639_v38 = vpop.permute.xlu1 %286 }
 0x17c   :  { %v790_v19 = vsel %vm788_vm4, %v2637_v37, %v2633_v35 }
 0x17d   :  { %v792_v27 = vmul.f32 %v790_v19, %v2473_v8 }
 0x17f   :  { %v293_v40 = vpop.permute.xlu1 %292  ;;  %v198_v41 = vpop.permute.xlu0 %197 }
 0x180   :  { %v299_v42 = vsel %vm298_vm13, %v2639_v38, %v293_v40  ;;  %v203_v43 = vmul.f32 %v198_v41, %v2577_v24 }
 0x181   :  { %v301_v45 = vmul.f32 %v299_v42, %v2577_v24 }
 0x182   :  { %2104 = vmatprep.mubr.msk.f32.mxu1 %vm113_vm0, %v203_v43 }
 0x183   :  { %2115 = vmatprep.mubr.msk.f32.mxu0 %vm113_vm0, %v301_v45  ;;  %v391_v47 = vpop.permute.xlu1 %390  ;;  %2105 = vmatmul.mubr.msk.f32.vlgmr.msra.gmra.mxu1 %vm113_vm0, %v204_v44  ;;  %v2652_v48 = vpop.permute.xlu0 %384 }
 0x184   :  { %2119 = vmatpush3.msk.msra.mxu1 %vm2495_vm3, %v2398_v18  ;;  %v397_v49 = vsel %vm396_vm14, %v2652_v48, %v391_v47  ;;  %2116 = vmatmul.mubr.msk.f32.vlgmr.msra.gmra.mxu0 %vm113_vm0, %v302_v46 }
 0x185   :  { %v399_v50 = vmul.f32 %v397_v49, %v2577_v24  ;;  %2120 = vmatprep.subr.msk.mxu1 %vm2509_vm6, %v2398_v18  ;;  %2130 = vmatpush3.msk.msra.mxu0 %vm2495_vm3, %v2398_v18 }
 0x186   :  { %2121 = vmatpush3.msk.msra.mxu1 %vm2509_vm6, %v2398_v18  ;;  %2131 = vmatprep.subr.msk.mxu0 %vm2509_vm6, %v2398_v18 }
 0x187   :  { %2122 = vmatprep.subr.msk.mxu1 %vm2526_vm9, %v2398_v18  ;;  %2132 = vmatpush3.msk.msra.mxu0 %vm2509_vm6, %v2398_v18  ;;  %v489_v52 = vpop.permute.xlu1 %488  ;;  %v2681_v53 = vpop.permute.xlu0 %482 }
 0x188   :  { %2123 = vmatpush3.msk.msra.mxu1 %vm2526_vm9, %v2398_v18  ;;  %2126 = vmatprep.mubr.msk.f32.mxu1 %vm113_vm0, %v399_v50  ;;  %v495_v54 = vsel %vm494_vm15, %v2681_v53, %v489_v52 }
 0x189   :  { %v497_v57 = vmul.f32 %v495_v54, %v2577_v24  ;;  %2124 = vmatprep.subr.msk.mxu1 %vm2541_vm12, %v2398_v18  ;;  %2133 = vmatprep.subr.msk.mxu0 %vm2526_vm9, %v2398_v18  ;;  %v92_v54 = vmul.u32 4, %v2481_v11 }
 0x18a   :  { %2125 = vmatpush3.msk.msra.mxu1 %vm2541_vm12, %v2398_v18  ;;  %2134 = vmatpush3.msk.msra.mxu0 %vm2526_vm9, %v2398_v18 }
 0x18b   :  { %2127 = vmatmul.mubr.msk.f32.vlgmr.msra.gmra.mxu1 %vm113_vm0, %v400_v55  ;;  %2135 = vmatprep.subr.msk.mxu0 %vm2541_vm12, %v2398_v18  ;;  %v587_v58 = vpop.permute.xlu1 %586  ;;  %v2709_v59 = vpop.permute.xlu0 %580 }
 0x18c   :  { %2140 = vmatprep.subr.msk.mxu1 %vm2495_vm3, %v2398_v18  ;;  %2136 = vmatpush3.msk.msra.mxu0 %vm2541_vm12, %v2398_v18  ;;  %v593_v61 = vsel %vm592_vm1, %v2709_v59, %v587_v58 }
 0x18d   :  { %2137 = vmatprep.mubr.msk.f32.mxu0 %vm113_vm0, %v497_v57  ;;  %2141 = vmatpush3.msk.msra.mxu1 %vm2495_vm3, %v2398_v18  ;;  %v595_v62 = vmul.f32 %v593_v61, %v2577_v24 }
 0x18e   :  { %2138 = vmatmul.mubr.msk.f32.vlgmr.msra.gmra.mxu0 %vm113_vm0, %v498_v60  ;;  %2142 = vmatprep.subr.msk.mxu1 %vm2509_vm6, %v2398_v18 }
 0x18f   :  { %2151 = vmatprep.subr.msk.mxu0 %vm2495_vm3, %v2398_v18  ;;  %2143 = vmatpush3.msk.msra.mxu1 %vm2509_vm6, %v2398_v18  ;;  %v685_v63 = vpop.permute.xlu1 %684  ;;  %v2735_v0 = vpop.permute.xlu0 %678 }
 0x190   :  { %2152 = vmatpush3.msk.msra.mxu0 %vm2495_vm3, %v2398_v18  ;;  %2144 = vmatprep.subr.msk.mxu1 %vm2526_vm9, %v2398_v18  ;;  %v691_v2 = vsel %vm690_vm2, %v2735_v0, %v685_v63 }
 0x191   :  { %2153 = vmatprep.subr.msk.mxu0 %vm2509_vm6, %v2398_v18  ;;  %2145 = vmatpush3.msk.msra.mxu1 %vm2526_vm9, %v2398_v18  ;;  %v693_v5 = vmul.f32 %v691_v2, %v2577_v24 }
 0x192   :  { %2148 = vmatprep.mubr.msk.f32.mxu1 %vm113_vm0, %v595_v62  ;;  %2154 = vmatpush3.msk.msra.mxu0 %vm2509_vm6, %v2398_v18 }
 0x193   :  { %2146 = vmatprep.subr.msk.mxu1 %vm2541_vm12, %v2398_v18  ;;  %2155 = vmatprep.subr.msk.mxu0 %vm2526_vm9, %v2398_v18  ;;  %v783_v6 = vpop.permute.xlu1 %782  ;;  %v2769_v7 = vpop.permute.xlu0 %776 }
 0x194   :  { %2147 = vmatpush3.msk.msra.mxu1 %vm2541_vm12, %v2398_v18  ;;  %2156 = vmatpush3.msk.msra.mxu0 %vm2526_vm9, %v2398_v18  ;;  %v789_v9 = vsel %vm788_vm4, %v2769_v7, %v783_v6 }
 0x195   :  { %2149 = vmatmul.mubr.msk.f32.vlgmr.msra.gmra.mxu1 %vm113_vm0, %v596_v3  ;;  %2157 = vmatprep.subr.msk.mxu0 %vm2541_vm12, %v2398_v18  ;;  %v791_v12 = vmul.f32 %v789_v9, %v2577_v24 }
 0x196   :  { %2162 = vmatprep.subr.msk.mxu1 %vm2495_vm3, %v2398_v18  ;;  %2158 = vmatpush3.msk.msra.mxu0 %vm2541_vm12, %v2398_v18 }
 0x197   :  { %2159 = vmatprep.mubr.msk.f32.mxu0 %vm113_vm0, %v693_v5  ;;  %2163 = vmatpush3.msk.msra.mxu1 %vm2495_vm3, %v2398_v18  ;;  %v881_v14 = vpop.permute.xlu1 %880  ;;  %v875_v15 = vpop.permute.xlu0 %874 }
 0x198   :  { %2160 = vmatmul.mubr.msk.f32.vlgmr.msra.gmra.mxu0 %vm113_vm0, %v694_v13  ;;  %2164 = vmatprep.subr.msk.mxu1 %vm2509_vm6, %v2398_v18  ;;  %v887_v16 = vsel %vm886_vm5, %v875_v15, %v881_v14 }
 0x199   :  { %2165 = vmatpush3.msk.msra.mxu1 %vm2509_vm6, %v2398_v18  ;;  %2170 = vmatprep.mubr.msk.f32.mxu1 %vm113_vm0, %v791_v12  ;;  %v889_v23 = vmul.f32 %v887_v16, %v2577_v24 }
 0x19a   :  { %2166 = vmatprep.subr.msk.mxu1 %vm2526_vm9, %v2398_v18  ;;  %2173 = vmatprep.subr.msk.mxu0 %vm2495_vm3, %v2398_v18 }
 0x19b   :  { %2167 = vmatpush3.msk.msra.mxu1 %vm2526_vm9, %v2398_v18  ;;  %2174 = vmatpush3.msk.msra.mxu0 %vm2495_vm3, %v2398_v18  ;;  %v883_v25 = vpop.permute.xlu1 %882  ;;  %v877_v26 = vpop.permute.xlu0 %876  ;;  %vm93_vm3 = vcmp.ge.s32.totalorder %v2479_v10, %v92_v54 }
 0x19c   :  { %2168 = vmatprep.subr.msk.mxu1 %vm2541_vm12, %v2398_v18  ;;  %2175 = vmatprep.subr.msk.mxu0 %vm2509_vm6, %v2398_v18  ;;  %v888_v29 = vsel %vm886_vm5, %v877_v26, %v883_v25 }
 0x19d   :  { %2169 = vmatpush3.msk.msra.mxu1 %vm2541_vm12, %v2398_v18  ;;  %2176 = vmatpush3.msk.msra.mxu0 %vm2509_vm6, %v2398_v18  ;;  %v890_v17 = vmul.f32 %v888_v29, %v2473_v8 }
 0x19e   :  { %2171 = vmatmul.mubr.msk.f32.vlgmr.msra.gmra.mxu1 %vm113_vm0, %v792_v27  ;;  %2177 = vmatprep.subr.msk.mxu0 %vm2526_vm9, %v2398_v18 }
 0x19f   :  { %2181 = vmatprep.mubr.msk.f32.mxu0 %vm113_vm0, %v889_v23  ;;  %2178 = vmatpush3.msk.msra.mxu0 %vm2526_vm9, %v2398_v18  ;;  %v2843_v24 = vpop.permute.xlu1 %1135  ;;  %v1227_v31 = vpop.permute.xlu0 %1226 }
 0x1a0   :  { %2179 = vmatprep.subr.msk.mxu0 %vm2541_vm12, %v2398_v18  ;;  %v2850_v20 = vsel %vm298_vm13, %v1227_v31, %v2621_v28 }
 0x1a1   :  { %2180 = vmatpush3.msk.msra.mxu0 %vm2541_vm12, %v2398_v18 }
 0x1a2   :  { %2182 = vmatmul.mubr.msk.f32.vlgmr.msra.gmra.mxu0 %vm113_vm0, %v890_v17 }
 0x1a3   :  { %v1322_v8 = vpop.permute.xlu1 %1321  ;;  %v1225_v21 = vpop.permute.xlu0 %1224 }
 0x1a4   :  { %v2858_v33 = vsel %vm298_vm13, %v1225_v21, %v2639_v38  ;;  %v2862_v35 = vsel %vm396_vm14, %v1322_v8, %v2623_v30 }
 0x1a7   :  { %v1417_v39 = vpop.permute.xlu1 %1416  ;;  %v1320_v40 = vpop.permute.xlu0 %1319 }
 0x1a8   :  { %v2866_v28 = vsel %vm396_vm14, %v1320_v40, %v2652_v48  ;;  %v2870_v22 = vsel %vm494_vm15, %v1417_v39, %v2627_v32 }
 0x1ab   :  { %v1512_v41 = vpop.permute.xlu1 %1511  ;;  %v1415_v42 = vpop.permute.xlu0 %1414 }
 0x1ac   :  { %v2874_v38 = vsel %vm592_vm1, %v1512_v41, %v2631_v34  ;;  %v2878_v30 = vsel %vm494_vm15, %v1415_v42, %v2681_v53 }
 0x1af   :  { %v2880_v43 = vpop.permute.xlu1 %1133  ;;  %v1510_v44 = vpop.permute.xlu0 %1509 }
 0x1b0   :  { %v2884_v45 = vsel %vm592_vm1, %v1510_v44, %v2709_v59 }
 0x1b3   :  { %v1607_v46 = vpop.permute.xlu1 %1606  ;;  %v1605_v32 = vpop.permute.xlu0 %1604 }
 0x1b4   :  { %v2888_v47 = vsel %vm690_vm2, %v1607_v46, %v2635_v36  ;;  %v2892_v34 = vsel %vm690_vm2, %v1605_v32, %v2735_v0  ;;  %v94_v36 = vadd.s32 1, %v2481_v11 }
 0x1b6   :  { %v95_v55 = vmul.u32 4, %v94_v36 }
 0x1b7   :  { %v2894_v48 = vpop.permute.xlu1 %1701  ;;  %v2896_v49 = vpop.permute.xlu0 %1699 }
 0x1b8   :  { %vm96_vm6 = vcmp.lt.s32.totalorder %v2479_v10, %v95_v55 }
 0x1b9   :  { %vm2908_vm7 = vmand %vm93_vm3, %vm96_vm6 }
 0x1ba   :  { %2184 = vmatprep.subr.msk.mxu1 %vm2908_vm7, %v2398_v18  ;;  %2204 = vmatprep.subr.msk.mxu0 %vm2908_vm7, %v2398_v18 }
 0x1bb   :  { %v1797_v50 = vpop.permute.xlu1 %1796  ;;  %v1795_v51 = vpop.permute.xlu0 %1794  ;;  %2185 = vmatpush3.msk.msra.mxu1 %vm2908_vm7, %v2398_v18  ;;  %2205 = vmatpush3.msk.msra.mxu0 %vm2908_vm7, %v2398_v18 }
 0x1bc   :  { %v2899_v52 = vsel %vm886_vm5, %v1797_v50, %v877_v26  ;;  %v2902_v53 = vsel %vm886_vm5, %v1795_v51, %v875_v15  ;;  %2189 = vmatprep.subr.msk.mxu1 %vm2908_vm7, %v2398_v18  ;;  %2214 = vmatprep.subr.msk.mxu0 %vm2908_vm7, %v2398_v18 }
 0x243   :  { %v2106_v10 = vpop.f32.mrf.mxu1 }
 0x244   :  { %v2117_v11 = vpop.f32.mrf.mxu0 }
 0x245   :  { %v277_v57 = vpop.f32.mrf.mxu1  ;;  %v973_v59 = vmax.f32 %v2106_v10, %v2117_v11 }
 0x246   :  { %v375_v60 = vpop.f32.mrf.mxu0 }
 0x247   :  { %v972_v0 = vmax.f32 %v277_v57, %v375_v60 }
 0x24b   :  { %v2128_v58 = vpop.f32.mrf.mxu1 }
 0x24c   :  { %v975_v61 = vmax.f32 %v973_v59, %v2128_v58 }
 0x24d   :  { %v473_v62 = vpop.f32.mrf.mxu1 }
 0x24e   :  { %v2139_v63 = vpop.f32.mrf.mxu0  ;;  %v974_v2 = vmax.f32 %v972_v0, %v473_v62 }
 0x24f   :  { %v977_v3 = vmax.f32 %v975_v61, %v2139_v63 }
 0x250   :  { %v571_v4 = vpop.f32.mrf.mxu0 }
 0x251   :  { %v976_v12 = vmax.f32 %v974_v2, %v571_v4 }
 0x255   :  { %v2150_v1 = vpop.f32.mrf.mxu1 }
 0x256   :  { %v979_v5 = vmax.f32 %v977_v3, %v2150_v1 }
 0x257   :  { %v669_v6 = vpop.f32.mrf.mxu1 }
 0x258   :  { %v2161_v9 = vpop.f32.mrf.mxu0  ;;  %v978_v14 = vmax.f32 %v976_v12, %v669_v6 }
 0x259   :  { %v981_v15 = vmax.f32 %v979_v5, %v2161_v9 }
 0x25a   :  { %v767_v16 = vpop.f32.mrf.mxu0 }
 0x25b   :  { %v980_v26 = vmax.f32 %v978_v14, %v767_v16 }
 0x25e   :  { %v2172_v13 = vpop.f32.mrf.mxu1 }
 0x25f   :  { %v983_v19 = vmax.f32 %v981_v15, %v2172_v13 }
 0x260   :  { %v865_v23 = vpop.f32.mrf.mxu1 }
 0x261   :  { %v982_v17 = vmax.f32 %v980_v26, %v865_v23 }
 0x262   :  { %v2183_v25 = vpop.f32.mrf.mxu0 }
 0x263   :  { %v985_v27 = vmax.f32 %v983_v19, %v2183_v25 }
 0x264   :  { %v963_v29 = vpop.f32.mrf.mxu0 }
 0x265   :  { %v987_v31 = vsub.f32 %v2106_v10, %v985_v27  ;;  %v993_v8 = vsub.f32 %v2117_v11, %v985_v27  ;;  %v999_v21 = vsub.f32 %v2128_v58, %v985_v27  ;;  %v1005_v39 = vsub.f32 %v2139_v63, %v985_v27 }
 0x266   :  { %v984_v42 = vmax.f32 %v982_v17, %v963_v29  ;;  %v1011_v46 = vsub.f32 %v2150_v1, %v985_v27  ;;  %v1017_v54 = vsub.f32 %v2161_v9, %v985_v27  ;;  %v1023_v61 = vsub.f32 %v2172_v13, %v985_v27 }
 0x267   :  { %v990_v40 = vmul.f32 1.442695, %v987_v31  ;;  %v996_v41 = vmul.f32 1.442695, %v993_v8  ;;  %v1002_v44 = vmul.f32 1.442695, %v999_v21 }
 0x268   :  { %v986_v32 = vsub.f32 %v277_v57, %v984_v42  ;;  %v1008_v50 = vmul.f32 1.442695, %v1005_v39  ;;  %v992_v51 = vsub.f32 %v375_v60, %v984_v42  ;;  %v1014_v36 = vmul.f32 1.442695, %v1011_v46 }
 0x269   :  { %2265 = vpow2.f32 %v990_v40  ;;  %v998_v55 = vsub.f32 %v473_v62, %v984_v42  ;;  %v1004_v11 = vsub.f32 %v571_v4, %v984_v42  ;;  %v1020_v58 = vmul.f32 1.442695, %v1017_v54 }
 0x26a   :  { %2267 = vpow2.f32 %v996_v41  ;;  %v988_v59 = vmul.f32 1.442695, %v986_v32  ;;  %v994_v10 = vmul.f32 1.442695, %v992_v51  ;;  %v1010_v0 = vsub.f32 %v669_v6, %v984_v42 }
 0x26b   :  { %2269 = vpow2.f32 %v1002_v44  ;;  %v1000_v63 = vmul.f32 1.442695, %v998_v55  ;;  %v1006_v1 = vmul.f32 1.442695, %v1004_v11  ;;  %v1016_v57 = vsub.f32 %v767_v16, %v984_v42 }
 0x26c   :  { %2271 = vpow2.f32 %v1008_v50  ;;  %v1026_v2 = vmul.f32 1.442695, %v1023_v61  ;;  %v1029_v60 = vsub.f32 %v2183_v25, %v985_v27  ;;  %v1012_v3 = vmul.f32 1.442695, %v1010_v0 }
 0x26d   :  { %2273 = vpow2.f32 %v1014_v36  ;;  %v1022_v5 = vsub.f32 %v865_v23, %v984_v42  ;;  %v1018_v9 = vmul.f32 1.442695, %v1016_v57  ;;  %v1028_v12 = vsub.f32 %v963_v29, %v984_v42 }
 0x26e   :  { %2275 = vpow2.f32 %v988_v59  ;;  %v1032_v13 = vmul.f32 1.442695, %v1029_v60 }
 0x26f   :  { %2277 = vpow2.f32 %v994_v10  ;;  %v1024_v6 = vmul.f32 1.442695, %v1022_v5  ;;  %v1030_v16 = vmul.f32 1.442695, %v1028_v12 }
 0x270   :  { %2279 = vpow2.f32 %v1020_v58 }
 0x271   :  { %2281 = vpow2.f32 %v1000_v63 }
 0x272   :  { %2283 = vpow2.f32 %v1006_v1 }
 0x273   :  { %2285 = vpow2.f32 %v1026_v2 }
 0x274   :  { %2287 = vpow2.f32 %v1012_v3 }
 0x275   :  { %2289 = vpow2.f32 %v1018_v9 }
 0x276   :  { %v2266_v62 = vpop.eup %2265  ;;  %2291 = vpow2.f32 %v1032_v13 }
 0x277   :  { %v2268_v4 = vpop.eup %2267  ;;  %2293 = vpow2.f32 %v1024_v6 }
 0x278   :  { %v1035_v14 = vadd.f32 %v2268_v4, %v2266_v62  ;;  %v2270_v15 = vpop.eup %2269  ;;  %2295 = vpow2.f32 %v1030_v16  ;;  %v1809_v16 = vld [vmem:[#allocation7 + $0x18] sm:$0xff] }
 0x279   :  { %v2272_v26 = vpop.eup %2271 }
 0x27a   :  { %v1037_v19 = vadd.f32 %v2270_v15, %v1035_v14  ;;  %v2274_v27 = vpop.eup %2273 }
 0x27b   :  { %v2276_v23 = vpop.eup %2275 }
 0x27c   :  { %v1039_v25 = vadd.f32 %v2272_v26, %v1037_v19  ;;  %v2278_v31 = vpop.eup %2277 }
 0x27d   :  { %v2280_v29 = vpop.eup %2279  ;;  %v1034_v8 = vadd.f32 %v2278_v31, %v2276_v23 }
 0x27e   :  { %v1041_v17 = vadd.f32 %v2274_v27, %v1039_v25  ;;  %v2282_v21 = vpop.eup %2281  ;;  %v1807_v25 = vld [vmem:[#allocation7 + $0x8] sm:$0xff] }
 0x27f   :  { %v1036_v40 = vadd.f32 %v2282_v21, %v1034_v8  ;;  %v2284_v41 = vpop.eup %2283 }
 0x280   :  { %v1043_v39 = vadd.f32 %v2280_v29, %v1041_v17  ;;  %v2286_v42 = vpop.eup %2285 }
 0x281   :  { %v1038_v44 = vadd.f32 %v2284_v41, %v1036_v40  ;;  %v2288_v46 = vpop.eup %2287 }
 0x282   :  { %v1045_v32 = vadd.f32 %v2286_v42, %v1043_v39  ;;  %v2290_v51 = vpop.eup %2289 }
 0x283   :  { %v1040_v50 = vadd.f32 %v2288_v46, %v1038_v44  ;;  %v2292_v54 = vpop.eup %2291 }
 0x284   :  { %v2294_v55 = vpop.eup %2293  ;;  %v1047_v59 = vadd.f32 %v2292_v54, %v1045_v32 }
 0x285   :  { %v1042_v36 = vadd.f32 %v2290_v51, %v1040_v50  ;;  %v2296_v11 = vpop.eup %2295 }
 0x286   :  { %2297 = vrcp.f32 %v1047_v59 }
 0x287   :  { %v1044_v10 = vadd.f32 %v2294_v55, %v1042_v36 }
 0x289   :  { %v1046_v58 = vadd.f32 %v2296_v11, %v1044_v10 }
 0x28b   :  { %2299 = vrcp.f32 %v1046_v58 }
 0x293   :  { %v2298_v61 = vpop.eup %2297 }
 0x294   :  { %v1051_v57 = vmul.f32 %v2298_v61, %v2266_v62  ;;  %v1427_v2 = vmul.f32 %v2298_v61, %v2274_v27  ;;  %v1142_v5 = vmul.f32 %v2298_v61, %v2268_v4  ;;  %v1617_v62 = vmul.f32 %v2298_v61, %v2286_v42  ;;  %v1806_v27 = vld [vmem:[#allocation7] sm:$0xff] }
 0x295   :  { %v1237_v12 = vmul.f32 %v2298_v61, %v2270_v15  ;;  %v1332_v13 = vmul.f32 %v2298_v61, %v2272_v26  ;;  %v1522_v6 = vmul.f32 %v2298_v61, %v2280_v29  ;;  %v1712_v19 = vmul.f32 %v2298_v61, %v2292_v54  ;;  %v1808_v26 = vld [vmem:[#allocation7 + $0x10] sm:$0xff] }
 0x298   :  { %v2300_v63 = vpop.eup %2299 }
 0x299   :  { %v1050_v0 = vmul.f32 %v2300_v63, %v2276_v23  ;;  %v1426_v1 = vmul.f32 %v2300_v63, %v2288_v46  ;;  %v1141_v60 = vmul.f32 %v2300_v63, %v2278_v31  ;;  %v1616_v3 = vmul.f32 %v2300_v63, %v2294_v55 }
 0x29a   :  { %v1236_v9 = vmul.f32 %v2300_v63, %v2282_v21  ;;  %v1331_v4 = vmul.f32 %v2300_v63, %v2284_v41  ;;  %v1521_v14 = vmul.f32 %v2300_v63, %v2290_v51  ;;  %v1711_v15 = vmul.f32 %v2300_v63, %v2296_v11 }
 0x29b   :  { %2186 = vmatprep.mubr.msk.f32.mxu1 %vm788_vm4, %v1050_v0  ;;  %2206 = vmatprep.mubr.msk.f32.mxu0 %vm788_vm4, %v1426_v1 }
 0x29c   :  { %2187 = vmatmul.mubr.msk.f32.vlgmr.msra.gmra.mxu1 %vm788_vm4, %v1051_v57  ;;  %2207 = vmatmul.mubr.msk.f32.vlgmr.msra.gmra.mxu0 %vm788_vm4, %v1427_v2 }
 0x29d   :  { %2190 = vmatpush3.msk.msra.mxu1 %vm2908_vm7, %v2398_v18  ;;  %2191 = vmatprep.mubr.msk.f32.mxu1 %vm788_vm4, %v1141_v60 }
 0x29e   :  { %2216 = vmatprep.mubr.msk.f32.mxu0 %vm788_vm4, %v1616_v3  ;;  %2194 = vmatprep.subr.msk.mxu1 %vm2908_vm7, %v2398_v18 }
 0x29f   :  { %2215 = vmatpush3.msk.msra.mxu0 %vm2908_vm7, %v2398_v18 }
 0x2a0   :  { %2192 = vmatmul.mubr.msk.f32.vlgmr.msra.gmra.mxu1 %vm788_vm4, %v1142_v5  ;;  %2217 = vmatmul.mubr.msk.f32.vlgmr.msra.gmra.mxu0 %vm788_vm4, %v1617_v62 }
 0x2a1   :  { %2195 = vmatpush3.msk.msra.mxu1 %vm2908_vm7, %v2398_v18  ;;  %2196 = vmatprep.mubr.msk.f32.mxu1 %vm788_vm4, %v1236_v9 }
 0x2a2   :  { %2199 = vmatprep.subr.msk.mxu1 %vm2908_vm7, %v2398_v18  ;;  %2224 = vmatprep.subr.mxu0 %v1809_v16 }
 0x2a3   :  { %2225 = vmatpush3.msra.mxu0 %v1809_v16 }
 0x2a4   :  { %2197 = vmatmul.mubr.msk.f32.vlgmr.msra.gmra.mxu1 %vm788_vm4, %v1237_v12  ;;  %2226 = vmatprep.subr.mxu0 %v1808_v26 }
 0x2a5   :  { %2200 = vmatpush3.msk.msra.mxu1 %vm2908_vm7, %v2398_v18  ;;  %2201 = vmatprep.mubr.msk.f32.mxu1 %vm788_vm4, %v1331_v4 }
 0x2a6   :  { %2209 = vmatprep.subr.msk.mxu1 %vm2908_vm7, %v2398_v18  ;;  %2227 = vmatpush3.msra.mxu0 %v1808_v26 }
 0x2a7   :  { %2228 = vmatprep.subr.mxu0 %v1807_v25 }
 0x2a8   :  { %2202 = vmatmul.mubr.msk.f32.vlgmr.msra.gmra.mxu1 %vm788_vm4, %v1332_v13  ;;  %2229 = vmatpush3.msra.mxu0 %v1807_v25 }
 0x2a9   :  { %2210 = vmatpush3.msk.msra.mxu1 %vm2908_vm7, %v2398_v18  ;;  %2211 = vmatprep.mubr.msk.f32.mxu1 %vm788_vm4, %v1521_v14 }
 0x2aa   :  { %2219 = vmatprep.subr.msk.mxu1 %vm2908_vm7, %v2398_v18  ;;  %2230 = vmatprep.subr.mxu0 %v1806_v27 }
 0x2ab   :  { %2231 = vmatpush3.msra.mxu0 %v1806_v27 }
 0x2ac   :  { %2212 = vmatmul.mubr.msk.f32.vlgmr.msra.gmra.mxu1 %vm788_vm4, %v1522_v6 }
 0x2ad   :  { %2220 = vmatpush3.msk.msra.mxu1 %vm2908_vm7, %v2398_v18  ;;  %2221 = vmatprep.mubr.msk.f32.mxu1 %vm788_vm4, %v1711_v15 }
 0x2b0   :  { %2222 = vmatmul.mubr.msk.f32.vlgmr.msra.gmra.mxu1 %vm788_vm4, %v1712_v19 }
 0x35c   :  { %v2188_v23 = vpop.f32.mrf.mxu1  ;;  %v2208_v31 = vpop.f32.mrf.mxu0 }
 0x35d   :  { %v1140_v8 = vmul.f32 %v2188_v23, %v2843_v24 }
 0x35e   :  { %v1124_v56 = vpop.f32.mrf.mxu1  ;;  %v1500_v44 = vpop.f32.mrf.mxu0 }
 0x35f   :  { %v1139_v40 = vmul.f32 %v2880_v43, %v1124_v56 }
 0x360   :  { %v2193_v18 = vpop.f32.mrf.mxu1  ;;  %v2218_v55 = vpop.f32.mrf.mxu0 }
 0x361   :  { %v1233_v17 = vmul.f32 %v2193_v18, %v2850_v20 }
 0x362   :  { %v1215_v29 = vpop.f32.mrf.mxu1  ;;  %v1690_v63 = vpop.f32.mrf.mxu0 }
 0x363   :  { %v1232_v21 = vmul.f32 %v2858_v33, %v1215_v29  ;;  %v1235_v41 = vadd.f32 %v1233_v17, %v1140_v8  ;;  %v1518_v33 = vmul.f32 %v2208_v31, %v2874_v38 }
 0x364   :  { %v2198_v39 = vpop.f32.mrf.mxu1 }
 0x365   :  { %v1328_v42 = vmul.f32 %v2198_v39, %v2862_v35  ;;  %v1234_v32 = vadd.f32 %v1232_v21, %v1139_v40  ;;  %v1517_v35 = vmul.f32 %v2884_v45, %v1500_v44 }
 0x366   :  { %v1310_v46 = vpop.f32.mrf.mxu1 }
 0x367   :  { %v1330_v50 = vadd.f32 %v1328_v42, %v1235_v41  ;;  %v1327_v51 = vmul.f32 %v2866_v28, %v1310_v46  ;;  %v1706_v28 = vsel %vm788_vm4, %v2894_v48, %v2637_v37 }
 0x368   :  { %v2203_v54 = vpop.f32.mrf.mxu1  ;;  %v1708_v0 = vmul.f32 %v2218_v55, %v1706_v28 }
 0x369   :  { %v1329_v20 = vadd.f32 %v1327_v51, %v1234_v32  ;;  %v1423_v36 = vmul.f32 %v2203_v54, %v2870_v22 }
 0x36a   :  { %v1405_v24 = vpop.f32.mrf.mxu1 }
 0x36b   :  { %v1425_v59 = vadd.f32 %v1423_v36, %v1330_v50  ;;  %v1422_v43 = vmul.f32 %v2878_v30, %v1405_v24  ;;  %v1705_v30 = vsel %vm788_vm4, %v2896_v49, %v2769_v7  ;;  %v1998_v7 = vld [vmem:[%s3013_s4] ss:$0 sm:$0xff] }
 0x36c   :  { %v2213_v10 = vpop.f32.mrf.mxu1  ;;  %v1707_v2 = vmul.f32 %v1705_v30, %v1690_v63 }
 0x36d   :  { %v1424_v11 = vadd.f32 %v1422_v43, %v1329_v20  ;;  %v1520_v58 = vadd.f32 %v1518_v33, %v1425_v59  ;;  %v1613_v61 = vmul.f32 %v2213_v10, %v2888_v47 }
 0x36e   :  { %v1595_v22 = vpop.f32.mrf.mxu1 }
 0x36f   :  { %v1615_v1 = vadd.f32 %v1613_v61, %v1520_v58  ;;  %v1519_v57 = vadd.f32 %v1517_v35, %v1424_v11  ;;  %v1612_v38 = vmul.f32 %v2892_v34, %v1595_v22 }
 0x370   :  { %v2223_v45 = vpop.f32.mrf.mxu1 }
 0x371   :  { %v1614_v60 = vadd.f32 %v1612_v38, %v1519_v57  ;;  %v1710_v3 = vadd.f32 %v1708_v0, %v1615_v1  ;;  %v1803_v47 = vmul.f32 %v2223_v45, %v2899_v52 }
 0x372   :  { %v1785_v5 = vpop.f32.mrf.mxu1 }
 0x373   :  { %v1805_v62 = vadd.f32 %v1803_v47, %v1710_v3  ;;  %v1709_v37 = vadd.f32 %v1707_v2, %v1614_v60  ;;  %v1802_v48 = vmul.f32 %v2902_v53, %v1785_v5 }
 0x375   :  { %v1804_v9 = vadd.f32 %v1802_v48, %v1709_v37 }
 0x377   :  { %2232 = vmatprep.mubr.msk.f32.mxu0 %vm113_vm0, %v1804_v9 }
 0x378   :  { %2233 = vmatmul.mubr.msk.f32.vlgmr.msra.gmra.mxu0 %vm113_vm0, %v1805_v62 }
 0x438   :  { %v2234_v34 = vpop.f32.mrf.mxu0 }
 0x439   :  { %v1895_v49 = vadd.f32 %v2234_v34, %v1998_v7 }
 0x43a   :  { %v1889_v12 = vpop.f32.mrf.mxu0 }
 0x43b   :  { %1899 = vst.msk [vmem:[#allocation8 + $0x8] sm:$0xff] %vm113_vm0, %v1895_v49  ;;  %v1890_v52 = vadd.f32 %v1998_v7, %v1889_v12 }
 0x43d   :  { %1898 = vst.msk [vmem:[#allocation8] sm:$0xff] %vm113_vm0, %v1890_v52 }
 0x43e   :  { %2372 = shalt.err (!%p2369_p5)
}
 0x43f   :  { %1911 = dma.vmem_to_hbm [thread:$0]  %s1906_s3, 256, %s3014_s5, [#allocation4], %s2389_s23, %s2389_s23, %s2390_s24  }
 0x440   :  { %2385 = dma.done.wait [#allocation4], 256  }
 0x441   :  { %2386 = vsyncadd [#allocation4], 4294967040 }
 0x442   :  { %1915 = vsyncpa [#allocation3], 1 }
 0x443   :  { %1916 = vsyncpa [#allocation6], 1 }
 0x444   :  { %1917 = vsyncpa [#allocation4], 1 }

</bundles_post_ra>
